<compile_context>
chip_gen: v6e
topology: v6e:2x2x1
jax: 0.10.0
libtpu: 0.0.40
codegen_flags: <defaults>
</compile_context>

<pallas_src>
import functools

import jax
import jax.numpy as jnp
import numpy as np
from jax.experimental import pallas as pl
from jax.experimental.pallas import tpu as pltpu

BN_EPS = 1e-5
_LANE = 128
_VMEM_BUDGET = 46 * 1024 * 1024   # per-step block budget (fits v7x's 64 MiB physical VMEM)
_VMEM_LIMIT = 48 * 1024 * 1024    # explicit scoped-VMEM limit for both pallas_calls


def _round_up(x, m):
    return -(-x // m) * m


def _conv_tile(xt_ref, xh_ref, w_ref, *, l_tile, k_taps):
    """One (Cout, L_tile) f32 conv tile from a (Cin, L_tile) tile + (Cin, H) halo."""
    # Current tile plus the next K-1 columns; the halo lands at a 128-aligned offset.
    xw = jnp.concatenate([xt_ref[...], xh_ref[...]], axis=1)   # (Cin, L_tile + H) bf16
    cout = w_ref.shape[1]
    acc = jnp.zeros((cout, l_tile), jnp.float32)
    for kk in range(k_taps):                                   # static unroll, K small
        acc = acc + jnp.dot(w_ref[kk], xw[:, kk:kk + l_tile],
                            preferred_element_type=jnp.float32)
    return acc


def _conv_stats_kernel(xt_ref, xh_ref, w_ref, sum_ref, sumsq_ref, *,
                       l_tile, l_out, k_taps, ragged):
    """Phase 1: per-batch-row (sum, sum_sq), accumulated across the L-tile grid axis."""
    lt = pl.program_id(1)
    acc = _conv_tile(xt_ref, xh_ref, w_ref, l_tile=l_tile, k_taps=k_taps)

    def accumulate(vals):
        s = jnp.sum(vals, axis=1, keepdims=True)            # (Cout, 1)
        ss = jnp.sum(vals * vals, axis=1, keepdims=True)    # (Cout, 1)

        @pl.when(lt == 0)
        def _():
            sum_ref[...] = s
            sumsq_ref[...] = ss

        @pl.when(lt > 0)
        def _():
            sum_ref[...] += s
            sumsq_ref[...] += ss

    if ragged:  # statically known; masking only runs on the partial last tile
        is_last = lt == pl.num_programs(1) - 1

        @pl.when(jnp.logical_not(is_last))
        def _():
            accumulate(acc)

        @pl.when(is_last)
        def _():
            lane = jax.lax.broadcasted_iota(jnp.int32, acc.shape, 1)
            accumulate(jnp.where(lane < l_out - lt * l_tile, acc, 0.0))
    else:
        accumulate(acc)


def _conv_bn_relu_kernel(xt_ref, xh_ref, w_ref, scale_ref, shift_ref, o_ref, *,
                         l_tile, k_taps):
    """Phase 2: recompute the conv tile and apply the folded BN affine + ReLU."""
    acc = _conv_tile(xt_ref, xh_ref, w_ref, l_tile=l_tile, k_taps=k_taps)
    o_ref[...] = jnp.maximum(acc * scale_ref[...] + shift_ref[...], 0.0)


@functools.partial(jax.jit, static_argnames=("stride", "l_tile"))
def conv_bn_relu(x_ncl, weight, bias, gamma, beta, *, stride=1, l_tile=1024):
    """Pallas implementation of ConvBNReLU.forward (training-mode BatchNorm).

    x_ncl:  (N, Cin, L)     PyTorch NCL layout
    weight: (Cout, Cin, K)  PyTorch Conv1d weight
    bias:   (Cout,)         conv bias (cancels exactly against the batch-mean subtraction)
    gamma:  (Cout,)         BN weight
    beta:   (Cout,)         BN bias
    returns (N, Cout, L_out) float32
    """
    del bias  # train-mode BN subtracts the batch mean -> per-channel constants cancel
    # TODO(synk): eval-mode BN (running stats) would need the bias re-added; running
    # mean/var updates are not produced here (forward output parity only).
    assert stride == 1  # TODO(synk): strided conv needs a strided tile/halo gather
    assert l_tile % _LANE == 0
    N, Cin, L = x_ncl.shape
    Cout, _, K = weight.shape
    pad = (K - 1) // 2
    L_out = L + 2 * pad - K + 1
    H = max(K - 1, 1)  # right-halo columns carried alongside each tile

    # Lane-dense L tile, capped so double-buffered x/out blocks stay inside the VMEM
    # budget (v7x only has 64 MiB physical VMEM; v5e/v6e have 128 MiB).
    per_col = 2 * (2 * Cin + 4 * Cout)          # bytes per L column, double-buffered
    cap = max(_LANE, ((_VMEM_BUDGET // per_col) // _LANE) * _LANE)
    L_tile = min(l_tile, _round_up(L_out, _LANE), cap)
    n_lt = pl.cdiv(L_out, L_tile)
    Lc = n_lt * L_tile
    ragged = (L_out % L_tile) != 0

    # Host prep: ONE bf16 padded copy of x (conv left pad + right pad out to Lc + H),
    # its non-overlapping tile view, and a tiny per-tile right-halo array. No K-fold
    # im2col duplication of x in HBM.
    x_bf = x_ncl.astype(jnp.bfloat16)
    x_full = jnp.pad(x_bf, ((0, 0), (0, 0), (pad, Lc + H - pad - L)))   # (N,Cin,Lc+H)
    x_main = x_full[:, :, :Lc]                                          # (N,Cin,Lc)
    halo_idx = (jnp.arange(1, n_lt + 1) * L_tile)[:, None] + jnp.arange(H)[None, :]
    x_halo = jnp.transpose(x_full[:, :, halo_idx], (0, 2, 1, 3))        # (N,n_lt,Cin,H)

    # Weights as (K, Cout, Cin) bf16: one small MXU matmul per tap (f32 accumulation).
    w_taps = jnp.transpose(weight, (2, 0, 1)).astype(jnp.bfloat16)

    x_tile_spec = pl.BlockSpec((None, Cin, L_tile), lambda n, lt: (n, 0, lt))
    x_halo_spec = pl.BlockSpec((None, None, Cin, H), lambda n, lt: (n, lt, 0, 0))
    w_spec = pl.BlockSpec((K, Cout, Cin), lambda n, lt: (0, 0, 0))

    conv_flops = 2 * N * n_lt * L_tile * K * Cin * Cout
    x_bytes = x_main.size * 2 + x_halo.size * 2 + w_taps.size * 2

    # ---- Phase 1: conv tiles -> per-row (sum, sum_sq) accumulators (no y writeback) --
    kernel1 = functools.partial(_conv_stats_kernel, l_tile=L_tile, l_out=L_out,
                                k_taps=K, ragged=ragged)
    sums, sumsqs = pl.pallas_call(
        kernel1,
        out_shape=(jax.ShapeDtypeStruct((N, Cout, 1), jnp.float32),
                   jax.ShapeDtypeStruct((N, Cout, 1), jnp.float32)),
        grid=(N, n_lt),
        in_specs=[x_tile_spec, x_halo_spec, w_spec],
        out_specs=(pl.BlockSpec((None, Cout, 1), lambda n, lt: (n, 0, 0)),
                   pl.BlockSpec((None, Cout, 1), lambda n, lt: (n, 0, 0))),
        compiler_params=pltpu.CompilerParams(
            # lt must stay sequential ("arbitrary"): stats accumulate across it in the
            # VMEM-resident output block; the batch axis feeds v7x's two TensorCores.
            dimension_semantics=("parallel", "arbitrary"),
            vmem_limit_bytes=_VMEM_LIMIT),
        cost_estimate=pl.CostEstimate(flops=conv_flops, transcendentals=0,
                                      bytes_accessed=x_bytes + 2 * N * Cout * 4),
    )(x_main, x_halo, w_taps)

    # ---- Tiny cross-row reduction + BN affine folding (plain JAX, O(Cout)) ----------
    cnt = float(N * L_out)
    mean = jnp.sum(sums, axis=0)[:, 0] / cnt
    ex2 = jnp.sum(sumsqs, axis=0)[:, 0] / cnt
    # One-pass (biased) variance, clamped at 0; matches PyTorch's forward normalizer.
    # TODO(synk): use a shifted/two-pass formulation if activations have |mean| >> std.
    var = jnp.maximum(ex2 - mean * mean, 0.0)
    inv = jax.lax.rsqrt(var + BN_EPS)
    scale = (gamma.astype(jnp.float32) * inv)[:, None]                   # (Cout, 1)
    shift = beta.astype(jnp.float32)[:, None] - mean[:, None] * scale    # (Cout, 1)

    # ---- Phase 2: recompute conv tile + fused BN affine + ReLU -> final output ------
    kernel2 = functools.partial(_conv_bn_relu_kernel, l_tile=L_tile, k_taps=K)
    out = pl.pallas_call(
        kernel2,
        out_shape=jax.ShapeDtypeStruct((N, Cout, L_out), jnp.float32),
        grid=(N, n_lt),
        in_specs=[x_tile_spec, x_halo_spec, w_spec,
                  pl.BlockSpec((Cout, 1), lambda n, lt: (0, 0)),
                  pl.BlockSpec((Cout, 1), lambda n, lt: (0, 0))],
        out_specs=pl.BlockSpec((None, Cout, L_tile), lambda n, lt: (n, 0, lt)),
        compiler_params=pltpu.CompilerParams(
            dimension_semantics=("parallel", "parallel"),
            vmem_limit_bytes=_VMEM_LIMIT),
        cost_estimate=pl.CostEstimate(
            flops=conv_flops + 2 * N * Cout * L_out, transcendentals=0,
            bytes_accessed=x_bytes + N * Cout * L_out * 4 + 2 * Cout * 4),
    )(x_main, x_halo, w_taps, scale, shift)
    return out


def ref_conv_bn_relu(x, w, b, gamma, beta, stride=1, conv_dtype=jnp.float32):
    """Pure-JAX reference matching PyTorch ConvBNReLU.forward (training-mode BN)."""
    pad = (w.shape[2] - 1) // 2
    y = jax.lax.conv_general_dilated(
        x.astype(conv_dtype), w.astype(conv_dtype), (stride,), [(pad, pad)],
        dimension_numbers=("NCH", "OIH", "NCH"),
        preferred_element_type=jnp.float32)
    y = y + b[None, :, None]
    mean = jnp.mean(y, axis=(0, 2), keepdims=True)
    var = jnp.mean((y - mean) ** 2, axis=(0, 2), keepdims=True)
    y = (y - mean) * jax.lax.rsqrt(var + BN_EPS) * gamma[None, :, None] + beta[None, :, None]
    return jnp.maximum(y, 0.0)


if __name__ == "__main__":
    key = jax.random.PRNGKey(0)
    k1, k2, k3, k4, k5 = jax.random.split(key, 5)

    # Small shapes consistent with the module (original example was [10, 3, 1024]).
    N, Cin, L = 2, 3, 1024
    Cout, K = 8, 3

    x = jax.random.normal(k1, (N, Cin, L), jnp.float32)

    # Deterministic parameter init (PyTorch-style uniform bound for conv).
    fan_in = Cin * K
    bound = 1.0 / (fan_in ** 0.5)
    weight = jax.random.uniform(k2, (Cout, Cin, K), jnp.float32, -bound, bound)
    bias = jax.random.uniform(k3, (Cout,), jnp.float32, -bound, bound)
    gamma = 1.0 + 0.1 * jax.random.normal(k4, (Cout,), jnp.float32)
    beta = 0.1 * jax.random.normal(k5, (Cout,), jnp.float32)

    # l_tile=384 -> 3 L-tiles with a ragged last tile: exercises the (batch, L-tile)
    # grid, the cross-tile stats accumulation and the masked partial-tile path.
    out = conv_bn_relu(x, weight, bias, gamma, beta, l_tile=384)
    out = jax.block_until_ready(out)
    assert out.shape == (N, Cout, L)

    # Tight check against a reference that matches the kernel's bf16 MXU inputs.
    ref_bf16 = ref_conv_bn_relu(x, weight, bias, gamma, beta, conv_dtype=jnp.bfloat16)
    np.testing.assert_allclose(np.asarray(out), np.asarray(ref_bf16),
                               rtol=2e-3, atol=2e-3)
    # Loose check against the full-f32 PyTorch-equivalent reference (bf16 MXU inputs
    # introduce ~0.4% relative error in the conv).
    ref_f32 = ref_conv_bn_relu(x, weight, bias, gamma, beta, conv_dtype=jnp.float32)
    np.testing.assert_allclose(np.asarray(out), np.asarray(ref_f32),
                               rtol=5e-2, atol=5e-2)

    print("KERNEL_OK")
</pallas_src>

<mosaic_0001>
module attributes {stable_mosaic.version = 11 : i64} {
  func.func @_conv_stats_kernel(%arg0: i32, %arg1: i32, %arg2: memref<1x3x384xbf16, #tpu.memory_space<vmem>>, %arg3: memref<1x1x3x2xbf16, #tpu.memory_space<vmem>>, %arg4: memref<3x8x3xbf16, #tpu.memory_space<vmem>>, %arg5: memref<1x8x1xf32, #tpu.memory_space<vmem>>, %arg6: memref<1x8x1xf32, #tpu.memory_space<vmem>>) attributes {dimension_semantics = [#tpu.dimension_semantics<parallel>, #tpu.dimension_semantics<arbitrary>], iteration_bounds = array<i64: 2, 3>, scalar_prefetch = 0 : i64, scratch_operands = 0 : i64, tpu.core_type = #tpu.core_type<tc>, window_params = [{transform_indices = @transform_0, window_bounds = array<i64: 1, 3, 384>}, {transform_indices = @transform_1, window_bounds = array<i64: 1, 1, 3, 2>}, {pipeline_mode = #tpu.pipeline_mode<synchronous>, transform_indices = @transform_2, window_bounds = array<i64: 3, 8, 3>}, {transform_indices = @transform_3, window_bounds = array<i64: 1, 8, 1>}, {transform_indices = @transform_4, window_bounds = array<i64: 1, 8, 1>}]} {
    %c0 = arith.constant 0 : index
    %c0_0 = arith.constant 0 : index
    %c0_1 = arith.constant 0 : index
    %0 = vector.load %arg2[%c0, %c0_0, %c0_1] : memref<1x3x384xbf16, #tpu.memory_space<vmem>>, vector<1x3x384xbf16>
    %1 = vector.shape_cast %0 : vector<1x3x384xbf16> to vector<3x384xbf16>
    %c0_2 = arith.constant 0 : index
    %c0_3 = arith.constant 0 : index
    %c0_4 = arith.constant 0 : index
    %c0_5 = arith.constant 0 : index
    %2 = vector.load %arg3[%c0_2, %c0_3, %c0_4, %c0_5] : memref<1x1x3x2xbf16, #tpu.memory_space<vmem>>, vector<1x1x3x2xbf16>
    %3 = vector.shape_cast %2 : vector<1x1x3x2xbf16> to vector<3x2xbf16>
    %4 = tpu.concatenate %1, %3 in 1 : vector<3x384xbf16>, vector<3x2xbf16> -> vector<3x386xbf16>
    %cst = arith.constant 0.000000e+00 : f32
    %5 = vector.broadcast %cst : f32 to vector<8x384xf32>
    %c0_6 = arith.constant 0 : index
    %c0_7 = arith.constant 0 : index
    %c0_8 = arith.constant 0 : index
    %6 = vector.load %arg4[%c0_6, %c0_7, %c0_8] : memref<3x8x3xbf16, #tpu.memory_space<vmem>>, vector<1x8x3xbf16>
    %7 = vector.shape_cast %6 : vector<1x8x3xbf16> to vector<8x3xbf16>
    %8 = vector.extract_strided_slice %4 {offsets = [0, 0], sizes = [3, 384], strides = [1, 1]} : vector<3x386xbf16> to vector<3x384xbf16>
    %cst_9 = arith.constant dense<0.000000e+00> : vector<8x384xf32>
    %9 = tpu.matmul %7, %8, %cst_9 {dimension_numbers = #tpu.dot_dimension_numbers<[1], [0], [0], [1], [0, 0, 1, 1], [], []>} : vector<8x3xbf16>, vector<3x384xbf16>, vector<8x384xf32> -> vector<8x384xf32>
    %10 = arith.addf %5, %9 : vector<8x384xf32>
    %c1 = arith.constant 1 : index
    %c0_10 = arith.constant 0 : index
    %c0_11 = arith.constant 0 : index
    %11 = vector.load %arg4[%c1, %c0_10, %c0_11] : memref<3x8x3xbf16, #tpu.memory_space<vmem>>, vector<1x8x3xbf16>
    %12 = vector.shape_cast %11 : vector<1x8x3xbf16> to vector<8x3xbf16>
    %13 = vector.extract_strided_slice %4 {offsets = [0, 1], sizes = [3, 384], strides = [1, 1]} : vector<3x386xbf16> to vector<3x384xbf16>
    %cst_12 = arith.constant dense<0.000000e+00> : vector<8x384xf32>
    %14 = tpu.matmul %12, %13, %cst_12 {dimension_numbers = #tpu.dot_dimension_numbers<[1], [0], [0], [1], [0, 0, 1, 1], [], []>} : vector<8x3xbf16>, vector<3x384xbf16>, vector<8x384xf32> -> vector<8x384xf32>
    %15 = arith.addf %10, %14 : vector<8x384xf32>
    %c2 = arith.constant 2 : index
    %c0_13 = arith.constant 0 : index
    %c0_14 = arith.constant 0 : index
    %16 = vector.load %arg4[%c2, %c0_13, %c0_14] : memref<3x8x3xbf16, #tpu.memory_space<vmem>>, vector<1x8x3xbf16>
    %17 = vector.shape_cast %16 : vector<1x8x3xbf16> to vector<8x3xbf16>
    %18 = vector.extract_strided_slice %4 {offsets = [0, 2], sizes = [3, 384], strides = [1, 1]} : vector<3x386xbf16> to vector<3x384xbf16>
    %cst_15 = arith.constant dense<0.000000e+00> : vector<8x384xf32>
    %19 = tpu.matmul %17, %18, %cst_15 {dimension_numbers = #tpu.dot_dimension_numbers<[1], [0], [0], [1], [0, 0, 1, 1], [], []>} : vector<8x3xbf16>, vector<3x384xbf16>, vector<8x384xf32> -> vector<8x384xf32>
    %20 = arith.addf %15, %19 : vector<8x384xf32>
    %c2_i32 = arith.constant 2 : i32
    %21 = arith.cmpi eq, %arg1, %c2_i32 : i32
    %true = arith.constant true
    %22 = arith.xori %21, %true : i1
    %23 = arith.extui %22 : i1 to i32
    %c0_i32 = arith.constant 0 : i32
    %24 = arith.cmpi ne, %23, %c0_i32 : i32
    scf.if %24 {
      %cst_17 = arith.constant dense<0.000000e+00> : vector<8xf32>
      %27 = vector.multi_reduction <add>, %20, %cst_17 [1] : vector<8x384xf32> to vector<8xf32>
      %28 = vector.shape_cast %27 : vector<8xf32> to vector<8x1xf32>
      %29 = arith.mulf %20, %20 : vector<8x384xf32>
      %cst_18 = arith.constant dense<0.000000e+00> : vector<8xf32>
      %30 = vector.multi_reduction <add>, %29, %cst_18 [1] : vector<8x384xf32> to vector<8xf32>
      %31 = vector.shape_cast %30 : vector<8xf32> to vector<8x1xf32>
      %c0_i32_19 = arith.constant 0 : i32
      %32 = arith.cmpi eq, %arg1, %c0_i32_19 : i32
      %33 = arith.extui %32 : i1 to i32
      %c0_i32_20 = arith.constant 0 : i32
      %34 = arith.cmpi ne, %33, %c0_i32_20 : i32
      scf.if %34 {
        %c0_23 = arith.constant 0 : index
        %c0_24 = arith.constant 0 : index
        %c0_25 = arith.constant 0 : index
        %38 = vector.load %arg5[%c0_23, %c0_24, %c0_25] : memref<1x8x1xf32, #tpu.memory_space<vmem>>, vector<1x8x1xf32>
        %39 = vector.shape_cast %38 : vector<1x8x1xf32> to vector<8x1xf32>
        %40 = vector.shape_cast %28 : vector<8x1xf32> to vector<1x8x1xf32>
        tpu.vector_store %arg5[%c0_23, %c0_24, %c0_25], %40 {strides = array<i32>} : memref<1x8x1xf32, #tpu.memory_space<vmem>>, vector<1x8x1xf32>,
        %c0_26 = arith.constant 0 : index
        %c0_27 = arith.constant 0 : index
        %c0_28 = arith.constant 0 : index
        %41 = vector.load %arg6[%c0_26, %c0_27, %c0_28] : memref<1x8x1xf32, #tpu.memory_space<vmem>>, vector<1x8x1xf32>
        %42 = vector.shape_cast %41 : vector<1x8x1xf32> to vector<8x1xf32>
        %43 = vector.shape_cast %31 : vector<8x1xf32> to vector<1x8x1xf32>
        tpu.vector_store %arg6[%c0_26, %c0_27, %c0_28], %43 {strides = array<i32>} : memref<1x8x1xf32, #tpu.memory_space<vmem>>, vector<1x8x1xf32>,
      } else {
      }
      %c0_i32_21 = arith.constant 0 : i32
      %35 = arith.cmpi sgt, %arg1, %c0_i32_21 : i32
      %36 = arith.extui %35 : i1 to i32
      %c0_i32_22 = arith.constant 0 : i32
      %37 = arith.cmpi ne, %36, %c0_i32_22 : i32
      scf.if %37 {
        %c0_23 = arith.constant 0 : index
        %c0_24 = arith.constant 0 : index
        %c0_25 = arith.constant 0 : index
        %38 = vector.load %arg5[%c0_23, %c0_24, %c0_25] : memref<1x8x1xf32, #tpu.memory_space<vmem>>, vector<1x8x1xf32>
        %39 = vector.shape_cast %38 : vector<1x8x1xf32> to vector<8x1xf32>
        %40 = arith.addf %39, %28 : vector<8x1xf32>
        %c0_26 = arith.constant 0 : index
        %c0_27 = arith.constant 0 : index
        %c0_28 = arith.constant 0 : index
        %41 = vector.load %arg5[%c0_26, %c0_27, %c0_28] : memref<1x8x1xf32, #tpu.memory_space<vmem>>, vector<1x8x1xf32>
        %42 = vector.shape_cast %41 : vector<1x8x1xf32> to vector<8x1xf32>
        %43 = vector.shape_cast %40 : vector<8x1xf32> to vector<1x8x1xf32>
        tpu.vector_store %arg5[%c0_26, %c0_27, %c0_28], %43 {strides = array<i32>} : memref<1x8x1xf32, #tpu.memory_space<vmem>>, vector<1x8x1xf32>,
        %c0_29 = arith.constant 0 : index
        %c0_30 = arith.constant 0 : index
        %c0_31 = arith.constant 0 : index
        %44 = vector.load %arg6[%c0_29, %c0_30, %c0_31] : memref<1x8x1xf32, #tpu.memory_space<vmem>>, vector<1x8x1xf32>
        %45 = vector.shape_cast %44 : vector<1x8x1xf32> to vector<8x1xf32>
        %46 = arith.addf %45, %31 : vector<8x1xf32>
        %c0_32 = arith.constant 0 : index
        %c0_33 = arith.constant 0 : index
        %c0_34 = arith.constant 0 : index
        %47 = vector.load %arg6[%c0_32, %c0_33, %c0_34] : memref<1x8x1xf32, #tpu.memory_space<vmem>>, vector<1x8x1xf32>
        %48 = vector.shape_cast %47 : vector<1x8x1xf32> to vector<8x1xf32>
        %49 = vector.shape_cast %46 : vector<8x1xf32> to vector<1x8x1xf32>
        tpu.vector_store %arg6[%c0_32, %c0_33, %c0_34], %49 {strides = array<i32>} : memref<1x8x1xf32, #tpu.memory_space<vmem>>, vector<1x8x1xf32>,
      } else {
      }
    } else {
    }
    %25 = arith.extui %21 : i1 to i32
    %c0_i32_16 = arith.constant 0 : i32
    %26 = arith.cmpi ne, %25, %c0_i32_16 : i32
    scf.if %26 {
      %27 = tpu.iota {dimensions = array<i32: 1>} : vector<8x384xi32>
      %c384_i32 = arith.constant 384 : i32
      %28 = arith.muli %arg1, %c384_i32 : i32
      %c1024_i32 = arith.constant 1024 : i32
      %29 = arith.subi %c1024_i32, %28 : i32
      %30 = vector.broadcast %29 : i32 to vector<8x384xi32>
      %31 = arith.cmpi slt, %27, %30 : vector<8x384xi32>
      %cst_17 = arith.constant 0.000000e+00 : f32
      %32 = vector.broadcast %cst_17 : f32 to vector<8x384xf32>
      %33 = arith.select %31, %20, %32 : vector<8x384xi1>, vector<8x384xf32>
      %cst_18 = arith.constant dense<0.000000e+00> : vector<8xf32>
      %34 = vector.multi_reduction <add>, %33, %cst_18 [1] : vector<8x384xf32> to vector<8xf32>
      %35 = vector.shape_cast %34 : vector<8xf32> to vector<8x1xf32>
      %36 = arith.mulf %33, %33 : vector<8x384xf32>
      %cst_19 = arith.constant dense<0.000000e+00> : vector<8xf32>
      %37 = vector.multi_reduction <add>, %36, %cst_19 [1] : vector<8x384xf32> to vector<8xf32>
      %38 = vector.shape_cast %37 : vector<8xf32> to vector<8x1xf32>
      %c0_i32_20 = arith.constant 0 : i32
      %39 = arith.cmpi eq, %arg1, %c0_i32_20 : i32
      %40 = arith.extui %39 : i1 to i32
      %c0_i32_21 = arith.constant 0 : i32
      %41 = arith.cmpi ne, %40, %c0_i32_21 : i32
      scf.if %41 {
        %c0_24 = arith.constant 0 : index
        %c0_25 = arith.constant 0 : index
        %c0_26 = arith.constant 0 : index
        %45 = vector.load %arg5[%c0_24, %c0_25, %c0_26] : memref<1x8x1xf32, #tpu.memory_space<vmem>>, vector<1x8x1xf32>
        %46 = vector.shape_cast %45 : vector<1x8x1xf32> to vector<8x1xf32>
        %47 = vector.shape_cast %35 : vector<8x1xf32> to vector<1x8x1xf32>
        tpu.vector_store %arg5[%c0_24, %c0_25, %c0_26], %47 {strides = array<i32>} : memref<1x8x1xf32, #tpu.memory_space<vmem>>, vector<1x8x1xf32>,
        %c0_27 = arith.constant 0 : index
        %c0_28 = arith.constant 0 : index
        %c0_29 = arith.constant 0 : index
        %48 = vector.load %arg6[%c0_27, %c0_28, %c0_29] : memref<1x8x1xf32, #tpu.memory_space<vmem>>, vector<1x8x1xf32>
        %49 = vector.shape_cast %48 : vector<1x8x1xf32> to vector<8x1xf32>
        %50 = vector.shape_cast %38 : vector<8x1xf32> to vector<1x8x1xf32>
        tpu.vector_store %arg6[%c0_27, %c0_28, %c0_29], %50 {strides = array<i32>} : memref<1x8x1xf32, #tpu.memory_space<vmem>>, vector<1x8x1xf32>,
      } else {
      }
      %c0_i32_22 = arith.constant 0 : i32
      %42 = arith.cmpi sgt, %arg1, %c0_i32_22 : i32
      %43 = arith.extui %42 : i1 to i32
      %c0_i32_23 = arith.constant 0 : i32
      %44 = arith.cmpi ne, %43, %c0_i32_23 : i32
      scf.if %44 {
        %c0_24 = arith.constant 0 : index
        %c0_25 = arith.constant 0 : index
        %c0_26 = arith.constant 0 : index
        %45 = vector.load %arg5[%c0_24, %c0_25, %c0_26] : memref<1x8x1xf32, #tpu.memory_space<vmem>>, vector<1x8x1xf32>
        %46 = vector.shape_cast %45 : vector<1x8x1xf32> to vector<8x1xf32>
        %47 = arith.addf %46, %35 : vector<8x1xf32>
        %c0_27 = arith.constant 0 : index
        %c0_28 = arith.constant 0 : index
        %c0_29 = arith.constant 0 : index
        %48 = vector.load %arg5[%c0_27, %c0_28, %c0_29] : memref<1x8x1xf32, #tpu.memory_space<vmem>>, vector<1x8x1xf32>
        %49 = vector.shape_cast %48 : vector<1x8x1xf32> to vector<8x1xf32>
        %50 = vector.shape_cast %47 : vector<8x1xf32> to vector<1x8x1xf32>
        tpu.vector_store %arg5[%c0_27, %c0_28, %c0_29], %50 {strides = array<i32>} : memref<1x8x1xf32, #tpu.memory_space<vmem>>, vector<1x8x1xf32>,
        %c0_30 = arith.constant 0 : index
        %c0_31 = arith.constant 0 : index
        %c0_32 = arith.constant 0 : index
        %51 = vector.load %arg6[%c0_30, %c0_31, %c0_32] : memref<1x8x1xf32, #tpu.memory_space<vmem>>, vector<1x8x1xf32>
        %52 = vector.shape_cast %51 : vector<1x8x1xf32> to vector<8x1xf32>
        %53 = arith.addf %52, %38 : vector<8x1xf32>
        %c0_33 = arith.constant 0 : index
        %c0_34 = arith.constant 0 : index
        %c0_35 = arith.constant 0 : index
        %54 = vector.load %arg6[%c0_33, %c0_34, %c0_35] : memref<1x8x1xf32, #tpu.memory_space<vmem>>, vector<1x8x1xf32>
        %55 = vector.shape_cast %54 : vector<1x8x1xf32> to vector<8x1xf32>
        %56 = vector.shape_cast %53 : vector<8x1xf32> to vector<1x8x1xf32>
        tpu.vector_store %arg6[%c0_33, %c0_34, %c0_35], %56 {strides = array<i32>} : memref<1x8x1xf32, #tpu.memory_space<vmem>>, vector<1x8x1xf32>,
      } else {
      }
    } else {
    }
    return
  }
  func.func @transform_0(%arg0: i32, %arg1: i32) -> (i32, i32, i32) {
    %c0_i32 = arith.constant 0 : i32
    %c0_i32_0 = arith.constant 0 : i32
    return %arg0, %c0_i32, %arg1 : i32, i32, i32
  }
  func.func @transform_1(%arg0: i32, %arg1: i32) -> (i32, i32, i32, i32) {
    %c0_i32 = arith.constant 0 : i32
    %c0_i32_0 = arith.constant 0 : i32
    %c0_i32_1 = arith.constant 0 : i32
    return %arg0, %arg1, %c0_i32, %c0_i32_0 : i32, i32, i32, i32
  }
  func.func @transform_2(%arg0: i32, %arg1: i32) -> (i32, i32, i32) {
    %c0_i32 = arith.constant 0 : i32
    %c0_i32_0 = arith.constant 0 : i32
    %c0_i32_1 = arith.constant 0 : i32
    %c0_i32_2 = arith.constant 0 : i32
    return %c0_i32, %c0_i32_0, %c0_i32_1 : i32, i32, i32
  }
  func.func @transform_3(%arg0: i32, %arg1: i32) -> (i32, i32, i32) {
    %c0_i32 = arith.constant 0 : i32
    %c0_i32_0 = arith.constant 0 : i32
    %c0_i32_1 = arith.constant 0 : i32
    return %arg0, %c0_i32, %c0_i32_0 : i32, i32, i32
  }
  func.func @transform_4(%arg0: i32, %arg1: i32) -> (i32, i32, i32) {
    %c0_i32 = arith.constant 0 : i32
    %c0_i32_0 = arith.constant 0 : i32
    %c0_i32_1 = arith.constant 0 : i32
    return %arg0, %c0_i32, %c0_i32_0 : i32, i32, i32
  }
}

module attributes {stable_mosaic.version = 11 : i64} {
  func.func @_conv_bn_relu_kernel(%arg0: i32, %arg1: i32, %arg2: memref<1x3x384xbf16, #tpu.memory_space<vmem>>, %arg3: memref<1x1x3x2xbf16, #tpu.memory_space<vmem>>, %arg4: memref<3x8x3xbf16, #tpu.memory_space<vmem>>, %arg5: memref<8x1xf32, #tpu.memory_space<vmem>>, %arg6: memref<8x1xf32, #tpu.memory_space<vmem>>, %arg7: memref<1x8x384xf32, #tpu.memory_space<vmem>>) attributes {dimension_semantics = [#tpu.dimension_semantics<parallel>, #tpu.dimension_semantics<parallel>], iteration_bounds = array<i64: 2, 3>, scalar_prefetch = 0 : i64, scratch_operands = 0 : i64, tpu.core_type = #tpu.core_type<tc>, window_params = [{transform_indices = @transform_0, window_bounds = array<i64: 1, 3, 384>}, {transform_indices = @transform_1, window_bounds = array<i64: 1, 1, 3, 2>}, {pipeline_mode = #tpu.pipeline_mode<synchronous>, transform_indices = @transform_2, window_bounds = array<i64: 3, 8, 3>}, {pipeline_mode = #tpu.pipeline_mode<synchronous>, transform_indices = @transform_3, window_bounds = array<i64: 8, 1>}, {pipeline_mode = #tpu.pipeline_mode<synchronous>, transform_indices = @transform_4, window_bounds = array<i64: 8, 1>}, {transform_indices = @transform_5, window_bounds = array<i64: 1, 8, 384>}]} {
    %c0 = arith.constant 0 : index
    %c0_0 = arith.constant 0 : index
    %c0_1 = arith.constant 0 : index
    %0 = vector.load %arg2[%c0, %c0_0, %c0_1] : memref<1x3x384xbf16, #tpu.memory_space<vmem>>, vector<1x3x384xbf16>
    %1 = vector.shape_cast %0 : vector<1x3x384xbf16> to vector<3x384xbf16>
    %c0_2 = arith.constant 0 : index
    %c0_3 = arith.constant 0 : index
    %c0_4 = arith.constant 0 : index
    %c0_5 = arith.constant 0 : index
    %2 = vector.load %arg3[%c0_2, %c0_3, %c0_4, %c0_5] : memref<1x1x3x2xbf16, #tpu.memory_space<vmem>>, vector<1x1x3x2xbf16>
    %3 = vector.shape_cast %2 : vector<1x1x3x2xbf16> to vector<3x2xbf16>
    %4 = tpu.concatenate %1, %3 in 1 : vector<3x384xbf16>, vector<3x2xbf16> -> vector<3x386xbf16>
    %cst = arith.constant 0.000000e+00 : f32
    %5 = vector.broadcast %cst : f32 to vector<8x384xf32>
    %c0_6 = arith.constant 0 : index
    %c0_7 = arith.constant 0 : index
    %c0_8 = arith.constant 0 : index
    %6 = vector.load %arg4[%c0_6, %c0_7, %c0_8] : memref<3x8x3xbf16, #tpu.memory_space<vmem>>, vector<1x8x3xbf16>
    %7 = vector.shape_cast %6 : vector<1x8x3xbf16> to vector<8x3xbf16>
    %8 = vector.extract_strided_slice %4 {offsets = [0, 0], sizes = [3, 384], strides = [1, 1]} : vector<3x386xbf16> to vector<3x384xbf16>
    %cst_9 = arith.constant dense<0.000000e+00> : vector<8x384xf32>
    %9 = tpu.matmul %7, %8, %cst_9 {dimension_numbers = #tpu.dot_dimension_numbers<[1], [0], [0], [1], [0, 0, 1, 1], [], []>} : vector<8x3xbf16>, vector<3x384xbf16>, vector<8x384xf32> -> vector<8x384xf32>
    %10 = arith.addf %5, %9 : vector<8x384xf32>
    %c1 = arith.constant 1 : index
    %c0_10 = arith.constant 0 : index
    %c0_11 = arith.constant 0 : index
    %11 = vector.load %arg4[%c1, %c0_10, %c0_11] : memref<3x8x3xbf16, #tpu.memory_space<vmem>>, vector<1x8x3xbf16>
    %12 = vector.shape_cast %11 : vector<1x8x3xbf16> to vector<8x3xbf16>
    %13 = vector.extract_strided_slice %4 {offsets = [0, 1], sizes = [3, 384], strides = [1, 1]} : vector<3x386xbf16> to vector<3x384xbf16>
    %cst_12 = arith.constant dense<0.000000e+00> : vector<8x384xf32>
    %14 = tpu.matmul %12, %13, %cst_12 {dimension_numbers = #tpu.dot_dimension_numbers<[1], [0], [0], [1], [0, 0, 1, 1], [], []>} : vector<8x3xbf16>, vector<3x384xbf16>, vector<8x384xf32> -> vector<8x384xf32>
    %15 = arith.addf %10, %14 : vector<8x384xf32>
    %c2 = arith.constant 2 : index
    %c0_13 = arith.constant 0 : index
    %c0_14 = arith.constant 0 : index
    %16 = vector.load %arg4[%c2, %c0_13, %c0_14] : memref<3x8x3xbf16, #tpu.memory_space<vmem>>, vector<1x8x3xbf16>
    %17 = vector.shape_cast %16 : vector<1x8x3xbf16> to vector<8x3xbf16>
    %18 = vector.extract_strided_slice %4 {offsets = [0, 2], sizes = [3, 384], strides = [1, 1]} : vector<3x386xbf16> to vector<3x384xbf16>
    %cst_15 = arith.constant dense<0.000000e+00> : vector<8x384xf32>
    %19 = tpu.matmul %17, %18, %cst_15 {dimension_numbers = #tpu.dot_dimension_numbers<[1], [0], [0], [1], [0, 0, 1, 1], [], []>} : vector<8x3xbf16>, vector<3x384xbf16>, vector<8x384xf32> -> vector<8x384xf32>
    %20 = arith.addf %15, %19 : vector<8x384xf32>
    %c0_16 = arith.constant 0 : index
    %c0_17 = arith.constant 0 : index
    %21 = vector.load %arg5[%c0_16, %c0_17] : memref<8x1xf32, #tpu.memory_space<vmem>>, vector<8x1xf32>
    %22 = vector.broadcast %21 : vector<8x1xf32> to vector<8x384xf32>
    %23 = arith.mulf %20, %22 : vector<8x384xf32>
    %c0_18 = arith.constant 0 : index
    %c0_19 = arith.constant 0 : index
    %24 = vector.load %arg6[%c0_18, %c0_19] : memref<8x1xf32, #tpu.memory_space<vmem>>, vector<8x1xf32>
    %25 = vector.broadcast %24 : vector<8x1xf32> to vector<8x384xf32>
    %26 = arith.addf %23, %25 : vector<8x384xf32>
    %cst_20 = arith.constant 0.000000e+00 : f32
    %27 = vector.broadcast %cst_20 : f32 to vector<8x384xf32>
    %28 = arith.maximumf %26, %27 : vector<8x384xf32>
    %c0_21 = arith.constant 0 : index
    %c0_22 = arith.constant 0 : index
    %c0_23 = arith.constant 0 : index
    %29 = vector.load %arg7[%c0_21, %c0_22, %c0_23] : memref<1x8x384xf32, #tpu.memory_space<vmem>>, vector<1x8x384xf32>
    %30 = vector.shape_cast %29 : vector<1x8x384xf32> to vector<8x384xf32>
    %31 = vector.shape_cast %28 : vector<8x384xf32> to vector<1x8x384xf32>
    tpu.vector_store %arg7[%c0_21, %c0_22, %c0_23], %31 {strides = array<i32>} : memref<1x8x384xf32, #tpu.memory_space<vmem>>, vector<1x8x384xf32>,
    return
  }
  func.func @transform_0(%arg0: i32, %arg1: i32) -> (i32, i32, i32) {
    %c0_i32 = arith.constant 0 : i32
    %c0_i32_0 = arith.constant 0 : i32
    return %arg0, %c0_i32, %arg1 : i32, i32, i32
  }
  func.func @transform_1(%arg0: i32, %arg1: i32) -> (i32, i32, i32, i32) {
    %c0_i32 = arith.constant 0 : i32
    %c0_i32_0 = arith.constant 0 : i32
    %c0_i32_1 = arith.constant 0 : i32
    return %arg0, %arg1, %c0_i32, %c0_i32_0 : i32, i32, i32, i32
  }
  func.func @transform_2(%arg0: i32, %arg1: i32) -> (i32, i32, i32) {
    %c0_i32 = arith.constant 0 : i32
    %c0_i32_0 = arith.constant 0 : i32
    %c0_i32_1 = arith.constant 0 : i32
    %c0_i32_2 = arith.constant 0 : i32
    return %c0_i32, %c0_i32_0, %c0_i32_1 : i32, i32, i32
  }
  func.func @transform_3(%arg0: i32, %arg1: i32) -> (i32, i32) {
    %c0_i32 = arith.constant 0 : i32
    %c0_i32_0 = arith.constant 0 : i32
    %c0_i32_1 = arith.constant 0 : i32
    return %c0_i32, %c0_i32_0 : i32, i32
  }
  func.func @transform_4(%arg0: i32, %arg1: i32) -> (i32, i32) {
    %c0_i32 = arith.constant 0 : i32
    %c0_i32_0 = arith.constant 0 : i32
    %c0_i32_1 = arith.constant 0 : i32
    return %c0_i32, %c0_i32_0 : i32, i32
  }
  func.func @transform_5(%arg0: i32, %arg1: i32) -> (i32, i32, i32) {
    %c0_i32 = arith.constant 0 : i32
    %c0_i32_0 = arith.constant 0 : i32
    return %arg0, %c0_i32, %arg1 : i32, i32, i32
  }
}

</mosaic_0001>

<bundles_post_ra>
// kernel: conv_bn_relu.3
= control target key start
LH: loop header
LB: loop body
LE: loop exit
PB: predicated region body
PF: predicated region fallthrough
CT: control target
= control target key end

     0   :  { %10 = vsyncpa [#allocation3], 0  ;;  %s1220_s0 = inlined_call_operand.vmem [shape: bf16[2,3,1152], index: 0, kind: input, shape index: {}]   ;;  %s1221_s1 = inlined_call_operand.vmem [shape: bf16[2,3,3,2], index: 1, kind: input, shape index: {}]   ;;  %s1222_s2 = inlined_call_operand.vmem [shape: bf16[3,8,3], index: 2, kind: input, shape index: {}]   ;;  %s1223_s3 = inlined_call_operand.vmem [shape: f32[8,1], index: 3, kind: input, shape index: {}]   ;;  %s1224_s4 = inlined_call_operand.vmem [shape: f32[8,1], index: 4, kind: input, shape index: {}]   ;;  %s1225_s5 = inlined_call_operand.hbm [shape: f32[2,8,1024], index: 5, kind: output, shape index: {}]  }
   0x1   :  { %12 = vsyncpa [#allocation3 + $0x1], 0  ;;  %s1032_s18 = smov 0   ;;  %s1034_s19 = smov 0  }
   0x2   :  { %s1036_s20 = smov 0   ;;  %s1038_s21 = smov 0  }
   0x3   :  { %s1040_s22 = smov 0   ;;  %s1042_s23 = smov 0  }
   0x4   :  { %s1044_s24 = smov 0   ;;  %s1046_s25 = smov 0  }
   0x5 LB: > { %1229 = sst [smem:[#allocation5_spill]] %s988_s24  ;;  %s770_s26 = sadd.s32 4294967295, %s992_s25   ;;  %s992_s25 = sphi %s1046_s25, %s18_s25   ;;  %s988_s24 = sphi %s1044_s24, %s1236_s24   ;;  %s984_s23 = sphi %s1042_s23, %s1241_s23   ;;  %s980_s22 = sphi %s1040_s22, %s1234_s22   ;;  %s976_s21 = sphi %s1038_s21, %s1240_s21   ;;  %s972_s20 = sphi %s1036_s20, %s1239_s20   ;;  %s968_s19 = sphi %s1034_s19, %s1238_s19   ;;  %s964_s18 = sphi %s1032_s18, %s1237_s18  }
   0x6   : > { %s771_s27 = sadd.s32 4294967294, %s992_s25   ;;  %s27_s28 = sadd.s32 1, %s984_s23 }
   0x7   : > { %p28_p0 = scmp.ge.s32.totalorder %s27_s28, 3  ;;  %s30_s29 = sadd.s32 1, %s988_s24 }
   0x8   : > { %p168_p1 = scmp.ne.s32.totalorder %s972_s20, %s968_s19  ;;  %p169_p2 = scmp.eq.s32.totalorder %s770_s26, 5 }
   0x9   : > { %s1243_s28 = smov (%p28_p0, %s27_s28), 0  ;;  %s1245_s29 = smov (!%p28_p0, %s30_s29), %s988_s24 }
   0xa   : > { %1230 = sst [smem:[#allocation6_spill]] %s1243_s28  ;;  %s154_s30 = ssub.s32 %s984_s23, %s1243_s28 }
   0xb   : > { %p1083_p3 = por %p169_p2, %p168_p1  ;;  %p32_p4 = scmp.ge.s32.totalorder %s1245_s29, 2 }
   0xc   : > { %p174_p5 = scmp.ne.s32.totalorder %s968_s19, %s964_s18  ;;  %p175_p6 = scmp.eq.s32.totalorder %s771_s27, 5 }
   0xd   : > { %p774_p7 = scmp.ge.s32.totalorder %s992_s25, 1  ;;  %s1247_s29 = smov (%p32_p4, %s1245_s29), 0 }
   0xe   : > { %1232 = sst [smem:[#allocation7_spill]] %s1247_s29  ;;  %p1092_p8 = por %p175_p6, %p174_p5 }
   0xf   : > { %p226_p9 = scmp.lt.s32.totalorder %s992_s25, 7  ;;  %s153_s8 = ssub.s32 %s988_s24, %s1247_s29 }
  0x10   : > { %s158_s9 = sadd.s32 1, %s972_s20  ;;  %s155_s10 = sor.u32 %s154_s30, %s153_s8 }
  0x11   : > { %p227_p10 = pnand %p774_p7, %p226_p9  ;;  %p156_p11 = scmp.eq.s32.totalorder %s155_s10, 0 }
  0x12   : > { %s1104_s12 = smul.u32 (!%p227_p10), 3, %s976_s21  ;;  %p267_p12 = scmp.lt.s32.totalorder (!%p227_p10), %s980_s22, 1 }
  0x13   : > { %s1101_s11 = scalar_select %p156_p11, %s972_s20, %s158_s9  }
  0x14   : > { %230 = sbr.rel (%p227_p10) target bundleno = 411 (0x19b), region = 40  ;;  %p278_p13 = scmp.lt.s32.totalorder (!%p227_p10), %s976_s21, 2 }
  0x15   : > { %p269_p0 = scmp.lt.s32.totalorder (!%p227_p10), %s1104_s12, 8  ;;  %s999_s28 = smov (!%p227_p10), 126  }
  0x19   : > { %v297_v0 = vlaneseq  ;;  %v994_v1 = vmov 1983009808   ;;  %s268_s13 = scalar_select %p267_p12, %s980_s22, 1  ;;  %v995_v6 = vmov 0.0   ;;  %vm996_vm0 = vmmov 0   ;;  %v626_v14 = vld [vmem:[%s1223_s3] sm:$0xff] }
  0x1a   : > { %v295_v2 = vunpack.c.l.s4 %v994_v1  ;;  %s270_s15 = scalar_select %p269_p0, %s1104_s12, 8  ;;  %799 = vmatprep.subr.bf16.mxu1 %v995_v6  ;;  %801 = vmatprep.mubr.msk.bf16.mxu1 %vm996_vm0, %v995_v6  ;;  %v997_v10 = vmov 0   ;;  %v635_v15 = vld [vmem:[%s1224_s4] sm:$0xff]  ;;  %vm329_vm1 = vcmask 1040384   ;;  %vm321_vm2 = vcmask 1039360  }
  0x1b   : > { %v298_v4 = vshrl.u32 %v297_v0, 7  ;;  %s818_s14 = smul.u32 9, %s268_s13  ;;  %s1249_s21 = smov (!%p278_p13, %s976_s21), 2  ;;  %374 = vmatprep.mubr.bf16.mxu0 %v997_v10  ;;  %897 = vset.pattern.permute.xlu0 %v997_v10  ;;  %vm330_vm3 = vcmask 1041408   ;;  %v1000_v18 = vmov 65535   ;;  %vm526_vm4 = vcmask 1031168  }
  0x1c   : > { %v296_v3 = vunpack.c.0.s8 %v295_v2  ;;  %s819_s17 = smul.u32 3, %s268_s13  ;;  %898 = vset.pattern.permute.xlu1 %v997_v10  ;;  %v331_v19 = vsel %vm329_vm1, 4294967295, %v1000_v18  ;;  %v777_v32 = vld [vmem:[%s1222_s2 + $0x4] sm:$0xf]  ;;  %vm325_vm5 = vcmask 23552  }
  0x1d   : > { %s272_s16 = sadd.s32 %s818_s14, %s270_s15  ;;  %v332_v23 = vsel %vm330_vm3, %v331_v19, 0  ;;  %v309_v42 = vld [vmem:[%s1222_s2] sm:$0xf]  ;;  %v782_v44 = vld [vmem:[%s1222_s2 + $0x8] sm:$0xf] }
  0x1e   : > { %v299_v5 = vsub.s32 %v296_v3, %v298_v4  ;;  %s775_s26 = sshll.u32 %s272_s16, 1  ;;  %s281_s9 = sadd.s32 %s819_s17, %s1249_s21 }
  0x1f   : > { %s274_s8 = scalar_lea.vmem %s1220_s0, %s775_s26  ;;  %s776_s10 = sshll.u32 %s281_s9, 1 }
  0x20   : > { %v290_v7 = vld [vmem:[%s274_s8] sm:$0x3f]  ;;  %s283_s24 = scalar_lea.vmem %s1221_s1, %s776_s10  ;;  %s998_s21 = smov 127  }
  0x21   : > { %v300_v8 = vrot.slane %v290_v7, %v299_v5  ;;  %v293_v9 = vcombine.high %v290_v7, %v290_v7  ;;  %v291_v12 = vld [vmem:[%s283_s24] sm:$0x3]  ;;  %s263_s8 = sand.u32 1, %s968_s19  }
  0x22   : > { %s817_s9 = smul.u32 24, %s263_s8 }
  0x23   : > { %313 = vrot.lane.b32.xlu1 %v300_v8, %s998_s21  ;;  %v308_v11 = vcombine.high %v300_v8, %v300_v8  ;;  %v307_v13 = vrot.slane %v293_v9, %v299_v5  ;;  %v427_v35 = vand.u32 %v332_v23, %v300_v8 }
  0x24   : > { %s265_s10 = scalar_lea.vmem [#allocation2], %s817_s9 }
  0x25   : > { %315 = vrot.lane.b32.xlu0 %v308_v11, %s998_s21  ;;  %v430_v29 = vand.u32 %v332_v23, %v308_v11  ;;  %v433_v33 = vand.u32 %v332_v23, %v307_v13 }
  0x27   : > { %319 = vrot.lane.b32.xlu1 %v291_v12, %s998_s21 }
  0x29   : > { %317 = vrot.lane.b32.xlu0 %v307_v13, %s998_s21  ;;  %s1161_s21 = scalar_lea.sflag [#allocation3], %s263_s8 }
  0x2b   : > { %522 = vrot.lane.b32.xlu1 %v307_v13, %s999_s28 }
  0x2d   : > { %520 = vrot.lane.b32.xlu0 %v308_v11, %s999_s28 }
  0x2f   : > { %524 = vrot.lane.b32.xlu1 %v291_v12, %s999_s28 }
  0x31   : > { %518 = vrot.lane.b32.xlu0 %v300_v8, %s999_s28  ;;  %s659_s28 = ssub.s32 (%p1083_p3), 8, %s1104_s12 }
  0x32   : > { %p660_p1 = scmp.lt.s32.totalorder (%p1083_p3), %s659_s28, 3 }
  0x33   : > { %638 = vperm.xlu1 %898, %v635_v15  }
  0x35   : > { %629 = vperm.xlu0 %897, %v626_v14  }
  0x95   : > { %v314_v16 = vpop.permute.xlu1 %313 }
  0x97   : > { %v316_v17 = vpop.permute.xlu0 %315 }
  0x98   : > { %v322_v21 = vsel %vm321_vm2, %v314_v16, %v316_v17 }
  0x99   : > { %v320_v20 = vpop.permute.xlu1 %319  ;;  %v334_v30 = vand.u32 %v332_v23, %v322_v21 }
  0x9b   : > { %v318_v22 = vpop.permute.xlu0 %317 }
  0x9c   : > { %v324_v24 = vsel %vm321_vm2, %v318_v22, %v320_v20  ;;  %v323_v25 = vsel %vm321_vm2, %v316_v17, %v318_v22 }
  0x9d   : > { %v337_v26 = vand.u32 %v332_v23, %v323_v25  ;;  %v340_v27 = vand.u32 %v332_v23, %v324_v24  ;;  %v523_v28 = vpop.permute.xlu1 %522 }
  0x9f   : > { %356 = vmatprep.subr.bf16.mxu0 %v337_v26  ;;  %800 = vmatpush3.bf16.msra.mxu1 %v340_v27  ;;  %v521_v31 = vpop.permute.xlu0 %520 }
  0xa0   : > { %357 = vmatpush1.bf16.msra.mxu0 %v334_v30  ;;  %v528_v34 = vsel %vm526_vm4, %v521_v31, %v523_v28  ;;  %805 = vmatprep.subr.bf16.mxu1 %v995_v6 }
  0xa1   : > { %v537_v36 = vand.u32 %v528_v34, %v332_v23  ;;  %449 = vmatprep.subr.bf16.mxu0 %v430_v29  ;;  %v525_v37 = vpop.permute.xlu1 %524 }
  0xa2   : > { %802 = vmatmul.mubr.msk.bf16.vlgmr.msra.gmra.mxu1 %vm325_vm5, %v777_v32  ;;  %v529_v39 = vsel %vm526_vm4, %v523_v28, %v525_v37 }
  0xa3   : > { %778 = vmatmul.mubr.msk.bf16.vlgmr.msra.gmra.mxu0 %vm325_vm5, %v777_v32  ;;  %v519_v38 = vpop.permute.xlu0 %518  ;;  %806 = vmatpush3.bf16.msra.mxu1 %v433_v33  ;;  %v540_v41 = vand.u32 %v529_v39, %v332_v23 }
  0xa4   : > { %450 = vmatpush1.bf16.msra.mxu0 %v427_v35  ;;  %807 = vmatprep.mubr.msk.bf16.mxu1 %vm996_vm0, %v995_v6  ;;  %v527_v40 = vsel %vm526_vm4, %v519_v38, %v521_v31 }
  0xa5   : > { %556 = vmatprep.subr.bf16.mxu0 %v537_v36  ;;  %811 = vmatprep.subr.bf16.mxu1 %v995_v6  ;;  %v534_v43 = vand.u32 %v527_v40, %v332_v23 }
  0xa6   : > { %467 = vmatprep.mubr.bf16.mxu0 %v997_v10 }
  0xaa   : > { %808 = vmatmul.mubr.msk.bf16.vlgmr.msra.gmra.mxu1 %vm325_vm5, %v309_v42 }
  0xab   : > { %812 = vmatpush3.bf16.msra.mxu1 %v540_v41  ;;  %780 = vmatmul.mubr.msk.bf16.vlgmr.msra.gmra.mxu0 %vm325_vm5, %v309_v42 }
  0xac   : > { %557 = vmatpush1.bf16.msra.mxu0 %v534_v43  ;;  %813 = vmatprep.mubr.msk.bf16.mxu1 %vm996_vm0, %v995_v6 }
  0xad   : > { %574 = vmatprep.mubr.bf16.mxu0 %v997_v10 }
  0xae   : > { %v639_v6 = vpop.permute.xlu1 %638 }
  0xb0   : > { %v630_v0 = vpop.permute.xlu0 %629 }
  0xb2   : > { %814 = vmatmul.mubr.msk.bf16.vlgmr.msra.gmra.mxu1 %vm325_vm5, %v782_v44 }
  0xb3   : > { %783 = vmatmul.mubr.msk.bf16.vlgmr.msra.gmra.mxu0 %vm325_vm5, %v782_v44 }
 0x162   : > { %v417_v45 = vpop.f32.mrf.mxu1 }
 0x163   : > { %v376_v46 = vpop.f32.mrf.mxu0 }
 0x164   : > { %v803_v47 = vpop.f32.mrf.mxu1 }
 0x165   : > { %v378_v48 = vpop.f32.mrf.mxu0 }
 0x166   : > { %v420_v49 = vpop.f32.mrf.mxu1 }
 0x167   : > { %v380_v50 = vpop.f32.mrf.mxu0 }
 0x168   : > { %v804_v51 = vpop.f32.mrf.mxu1 }
 0x169   : > { %v381_v52 = vpop.f32.mrf.mxu0 }
 0x16a   : > { %v510_v53 = vpop.f32.mrf.mxu1 }
 0x16b   : > { %v469_v54 = vpop.f32.mrf.mxu0  ;;  %v511_v60 = vadd.f32 %v510_v53, %v417_v45 }
 0x16c   : > { %v809_v55 = vpop.f32.mrf.mxu1  ;;  %v470_v62 = vadd.f32 %v469_v54, %v376_v46 }
 0x16d   : > { %v471_v56 = vpop.f32.mrf.mxu0 }
 0x16e   : > { %v513_v57 = vpop.f32.mrf.mxu1  ;;  %v472_v3 = vadd.f32 %v471_v56, %v378_v48 }
 0x16f   : > { %v473_v58 = vpop.f32.mrf.mxu0 }
 0x170   : > { %v810_v59 = vpop.f32.mrf.mxu1 }
 0x171   : > { %v474_v61 = vpop.f32.mrf.mxu0 }
 0x172   : > { %v617_v63 = vpop.f32.mrf.mxu1 }
 0x173   : > { %v625_v1 = vadd.f32 %v617_v63, %v511_v60  ;;  %v576_v2 = vpop.f32.mrf.mxu0 }
 0x174   : > { %v623_v4 = vadd.f32 %v576_v2, %v470_v62  ;;  %v815_v5 = vpop.f32.mrf.mxu1 }
 0x175   : > { %v634_v7 = vmul.f32 %v630_v0, %v625_v1  ;;  %v578_v8 = vpop.f32.mrf.mxu0 }
 0x176   : > { %v632_v9 = vmul.f32 %v630_v0, %v623_v4  ;;  %v624_v10 = vadd.f32 %v578_v8, %v472_v3  ;;  %v620_v11 = vpop.f32.mrf.mxu1 }
 0x177   : > { %v643_v12 = vadd.f32 %v639_v6, %v634_v7  ;;  %v580_v13 = vpop.f32.mrf.mxu0 }
 0x178   : > { %v633_v14 = vmul.f32 %v630_v0, %v624_v10  ;;  %v641_v15 = vadd.f32 %v639_v6, %v632_v9  ;;  %v816_v16 = vpop.f32.mrf.mxu1 }
 0x179   : > { %v646_v17 = vmax.f32 %v643_v12, 0.0  ;;  %v581_v18 = vpop.f32.mrf.mxu0 }
 0x17a   : > { %v642_v19 = vadd.f32 %v639_v6, %v633_v14  ;;  %v644_v20 = vmax.f32 %v641_v15, 0.0  ;;  %657 = sbr.rel (!%p1083_p3) target bundleno = 411 (0x19b), region = 44 }
 0x17b   : > { %649 = vst [vmem:[%s265_s10 + $0x10] sm:$0xff] %v646_v17 }
 0x17c   : > { %v645_v21 = vmax.f32 %v642_v19, 0.0  ;;  %647 = vst [vmem:[%s265_s10] sm:$0xff] %v644_v20 }
 0x17e   : > { %648 = vst [vmem:[%s265_s10 + $0x8] sm:$0xff] %v645_v21 }
 0x17f   : > { %s1251_s28 = smov (!%p660_p1, %s659_s28), 3 }
 0x180   : > { %s1166_s29 = sshll.u32 %s1251_s28, 7 }
 0x181   : > { %s664_s13 = ssub.s32 384, %s1166_s29 }
 0x182   : > { %665 = vsyncadd %s1161_s21, %s664_s13  ;;  %p786_p2 = scmp.ne.s32.totalorder %s1166_s29, 0  ;;  %s787_s14 = sshll.u32 %s980_s22, 3 }
 0x183   : > { %s668_s15 = sadd.s32 %s787_s14, %s1104_s12  ;;  %s673_s6 = sshll.u32 %s265_s10, 4  ;;  %s674_s6 = int_to_ptr.vmem [resolvable:$true] %s673_s6 }
 0x184   : > { %s788_s24 = sshll.u32 %s668_s15, 7  ;;  %s900_s27 = scalar_lea.vmem %s674_s6, %s1166_s29 }
 0x185   : > { %s670_s26 = scalar_lea.hbm %s1225_s5, %s788_s24  ;;  %p901_p3 = scmp.ne.s32.totalorder %s674_s6, %s900_s27 }
 0x186   : > { %s1001_s30 = smov [#allocation2]  }
 0x187   : > { %p902_p4 = pnand %p901_p3, %p786_p2  ;;  %s904_s8 = sshll.u32 %s1001_s30, 4  ;;  %s905_s8 = int_to_ptr.vmem [resolvable:$false] %s904_s8 }
 0x188   : > { %s906_s9 = scalar_lea.vmem %s905_s8, 768  ;;  %p907_p6 = scmp.lt.s32.totalorder %s674_s6, %s905_s8 }
 0x189   : > { %p903_p5 = pneg %p902_p4  ;;  %p908_p7 = scmp.lt.s32.totalorder %s906_s9, %s900_s27 }
 0x18b   : > { %p909_p9 = por %p908_p7, %p907_p6 }
 0x18d   : > { %p910_p10 = pnand %p909_p9, %p903_p5 }
 0x18f   : > { %913 = shalt.err (!%p910_p10)
}
 0x190   : > { %s914_s22 = scalar_lea.hbm %s670_s26, %s1166_s29  ;;  %s918_s28 = scalar_lea.hbm %s1225_s5, 2048 }
 0x191   : > { %p915_p11 = scmp.ne.s32.totalorder %s670_s26, %s914_s22  ;;  %p919_p0 = scmp.lt.s32.totalorder %s670_s26, %s1225_s5 }
 0x192   : > { %p920_p1 = scmp.lt.s32.totalorder %s918_s28, %s914_s22 }
 0x193   : > { %p916_p12 = pnand %p915_p11, %p786_p2 }
 0x194   : > { %p921_p3 = por %p920_p1, %p919_p0 }
 0x195   : > { %p917_p13 = pneg %p916_p12 }
 0x197   : > { %p922_p4 = pnand %p921_p3, %p917_p13 }
 0x199   : > { %925 = shalt.err (!%p922_p4)
}
 0x19a   : > { %676 = dma.vmem_to_hbm [thread:$0]  (%p786_p2), %s674_s6, %s1166_s29, %s670_s26, %s1161_s21  }
 0x19b PF: > { %p825_p5 = scmp.ge.s32.totalorder %s992_s25, 2  ;;  %s685_s15 = sand.u32 1, %s964_s18  }
 0x19c   : > { %s686_s24 = scalar_lea.sflag [#allocation3], %s685_s15 }
 0x19d   : > { %p822_p6 = pnand %p825_p5, %p1092_p8 }
 0x19f   : > { %p823_p7 = pneg %p822_p6 }
 0x1a1   : > { %959 = dma.done.wait (%p823_p7), %s686_s24, 384  }
 0x1a2   : > { %961 = vsyncadd (%p823_p7), %s686_s24, 4294966912  ;;  %s18_s25 = sadd.s32 1, %s992_s25   ;;  %s1234_s22 = sld [smem:[#allocation5_spill]] }
 0x1a3   : > { %p15_p9 = scmp.ge.s32.totalorder %s18_s25, 8   ;;  %s1235_s29 = sld [smem:[#allocation6_spill]] }
 0x1a4   : > { %s1236_s24 = sld [smem:[#allocation7_spill]]  ;;  %s1237_s18 = smov %s968_s19 }
 0x1a5   : > { %s1238_s19 = smov %s972_s20  ;;  %s1239_s20 = smov %s1101_s11 }
 0x1a6   : > { %s1240_s21 = smov %s984_s23  ;;  %17 = sbr.rel (!%p15_p9) target bundleno = 5 (0x5), region = 80 }
 0x1a9   : > { %s1241_s23 = smov %s1235_s29 }
 0x1ab   :  { %691 = vsyncpa [#allocation3], 1 }
 0x1ac   :  { %693 = vsyncpa [#allocation3 + $0x1], 1 }

// kernel: conv_bn_relu.2
= control target key start
LH: loop header
LB: loop body
LE: loop exit
PB: predicated region body
PF: predicated region fallthrough
CT: control target
= control target key end

     0   :  { %s972_s15 = smov 0   ;;  %s974_s16 = smov 0   ;;  %s1091_s0 = inlined_call_operand.vmem [shape: bf16[2,3,1152], index: 0, kind: input, shape index: {}]   ;;  %s1092_s1 = inlined_call_operand.vmem [shape: bf16[2,3,3,2], index: 1, kind: input, shape index: {}]   ;;  %s1093_s2 = inlined_call_operand.vmem [shape: bf16[3,8,3], index: 2, kind: input, shape index: {}]   ;;  %s1094_s3 = inlined_call_operand.vmem [shape: f32[2,8,1], index: 3, kind: output, shape index: {0}]   ;;  %s1095_s4 = inlined_call_operand.vmem [shape: f32[2,8,1], index: 4, kind: output, shape index: {1}]  }
   0x1   :  { %s976_s17 = smov 0   ;;  %s978_s18 = smov 0  }
   0x2   :  { %s980_s19 = smov 0  }
   0x3 LB: > { %s24_s20 = sadd.s32 1, %s930_s17  ;;  %s27_s21 = sadd.s32 1, %s934_s18  ;;  %s938_s19 = sphi %s980_s19, %s15_s19   ;;  %s934_s18 = sphi %s978_s18, %s1099_s18   ;;  %s930_s17 = sphi %s976_s17, %s1098_s17   ;;  %s926_s16 = sphi %s974_s16, %s1097_s16   ;;  %s922_s15 = sphi %s972_s15, %s1096_s15  }
   0x4   : > { %p25_p0 = scmp.ge.s32.totalorder %s24_s20, 3  ;;  %p805_p1 = scmp.ge.s32.totalorder %s938_s19, 1 }
   0x5   : > { %p199_p2 = scmp.lt.s32.totalorder %s938_s19, 7 }
   0x6   : > { %s1101_s20 = smov (%p25_p0, %s24_s20), 0  ;;  %s1103_s21 = smov (!%p25_p0, %s27_s21), %s934_s18 }
   0x7   : > { %p200_p3 = pnand %p805_p1, %p199_p2  ;;  %p29_p4 = scmp.ge.s32.totalorder %s1103_s21, 2 }
   0x8   : > { %s240_s22 = smul.u32 (!%p200_p3), 3, %s922_s15  ;;  %p241_p5 = scmp.lt.s32.totalorder (!%p200_p3), %s926_s16, 1 }
   0x9   : > { %s1105_s21 = smov (%p29_p4, %s1103_s21), 0  ;;  %203 = sbr.rel (%p200_p3) target bundleno = 699 (0x2bb), region = 32 }
   0xa   : > { %p243_p6 = scmp.lt.s32.totalorder (!%p200_p3), %s240_s22, 8  ;;  %p252_p7 = scmp.lt.s32.totalorder (!%p200_p3), %s922_s15, 2 }
   0xb   : > { %s944_s13 = smov (!%p200_p3), 127   ;;  %p818_p8 = scmp.eq.s32.totalorder (!%p200_p3), %s922_s15, 2 }
   0xe   : > { %v274_v0 = vlaneseq  ;;  %v940_v1 = vmov 1983009808   ;;  %s1107_s16 = smov (!%p241_p5, %s926_s16), 1  ;;  %s1109_s22 = smov (!%p243_p6, %s240_s22), 8  ;;  %v941_v6 = vmov 0.0   ;;  %vm942_vm0 = vmmov 0  }
   0xf   : > { %v272_v2 = vunpack.c.l.s4 %v940_v1  ;;  %s850_s23 = smul.u32 9, %s1107_s16  ;;  %s808_s24 = sshll.u32 %s1107_s16, 3  ;;  %832 = vmatprep.subr.bf16.mxu1 %v941_v6  ;;  %834 = vmatprep.mubr.msk.bf16.mxu1 %vm942_vm0, %v941_v6  ;;  %v943_v10 = vmov 0   ;;  %vm306_vm1 = vcmask 1040384   ;;  %vm298_vm2 = vcmask 1039360  }
  0x10   : > { %v275_v4 = vshrl.u32 %v274_v0, 7  ;;  %s1010_s27 = scalar_lea.vmem %s1094_s3, %s808_s24  ;;  %s1015_s30 = scalar_lea.vmem %s1095_s4, %s808_s24  ;;  %351 = vmatprep.mubr.bf16.mxu0 %v943_v10  ;;  %vm307_vm3 = vcmask 1041408   ;;  %v946_v16 = vmov 65535   ;;  %vm503_vm4 = vcmask 1031168   ;;  %v810_v30 = vld [vmem:[%s1093_s2 + $0x4] sm:$0xf] }
  0x11   : > { %v273_v3 = vunpack.c.0.s8 %v272_v2  ;;  %s246_s5 = sadd.s32 %s850_s23, %s1109_s22  ;;  %s851_s7 = smul.u32 3, %s1107_s16  ;;  %v308_v17 = vsel %vm306_vm1, 4294967295, %v946_v16  ;;  %vm302_vm5 = vcmask 23552   ;;  %v286_v40 = vld [vmem:[%s1093_s2] sm:$0xf] }
  0x12   : > { %s806_s6 = sshll.u32 %s246_s5, 1  ;;  %s945_s24 = smov 126   ;;  %v309_v21 = vsel %vm307_vm3, %v308_v17, 0  ;;  %v815_v42 = vld [vmem:[%s1093_s2 + $0x8] sm:$0xf] }
  0x13   : > { %v276_v5 = vsub.s32 %v273_v3, %v275_v4  ;;  %s248_s10 = scalar_lea.vmem %s1091_s0, %s806_s6  ;;  %p819_p9 = scmp.ne.s32.totalorder (!%p818_p8), %s922_s15, 0 }
  0x14   : > { %v267_v7 = vld [vmem:[%s248_s10] sm:$0x3f]  ;;  %s253_s11 = scalar_select %p252_p7, %s922_s15, 2 }
  0x15   : > { %v277_v8 = vrot.slane %v267_v7, %v276_v5  ;;  %v270_v9 = vcombine.high %v267_v7, %v267_v7 }
  0x16   : > { %s255_s12 = sadd.s32 %s851_s7, %s253_s11 }
  0x17   : > { %290 = vrot.lane.b32.xlu1 %v277_v8, %s944_s13  ;;  %v285_v11 = vcombine.high %v277_v8, %v277_v8  ;;  %s807_s14 = sshll.u32 %s255_s12, 1  ;;  %v284_v13 = vrot.slane %v270_v9, %v276_v5  ;;  %v404_v33 = vand.u32 %v309_v21, %v277_v8 }
  0x18   : > { %s257_s23 = scalar_lea.vmem %s1092_s1, %s807_s14 }
  0x19   : > { %292 = vrot.lane.b32.xlu0 %v285_v11, %s944_s13  ;;  %v268_v12 = vld [vmem:[%s257_s23] sm:$0x3]  ;;  %v407_v27 = vand.u32 %v309_v21, %v285_v11  ;;  %v410_v31 = vand.u32 %v309_v21, %v284_v13 }
  0x1b   : > { %296 = vrot.lane.b32.xlu1 %v268_v12, %s944_s13 }
  0x1d   : > { %294 = vrot.lane.b32.xlu0 %v284_v13, %s944_s13 }
  0x1f   : > { %499 = vrot.lane.b32.xlu1 %v284_v13, %s945_s24 }
  0x21   : > { %497 = vrot.lane.b32.xlu0 %v285_v11, %s945_s24 }
  0x23   : > { %501 = vrot.lane.b32.xlu1 %v268_v12, %s945_s24 }
  0x25   : > { %495 = vrot.lane.b32.xlu0 %v277_v8, %s945_s24 }
  0x89   : > { %v291_v14 = vpop.permute.xlu1 %290 }
  0x8b   : > { %v293_v15 = vpop.permute.xlu0 %292 }
  0x8c   : > { %v299_v19 = vsel %vm298_vm2, %v291_v14, %v293_v15 }
  0x8d   : > { %v297_v18 = vpop.permute.xlu1 %296  ;;  %v311_v28 = vand.u32 %v309_v21, %v299_v19 }
  0x8f   : > { %v295_v20 = vpop.permute.xlu0 %294 }
  0x90   : > { %v301_v22 = vsel %vm298_vm2, %v295_v20, %v297_v18  ;;  %v300_v23 = vsel %vm298_vm2, %v293_v15, %v295_v20 }
  0x91   : > { %v314_v24 = vand.u32 %v309_v21, %v300_v23  ;;  %v317_v25 = vand.u32 %v309_v21, %v301_v22  ;;  %v500_v26 = vpop.permute.xlu1 %499 }
  0x93   : > { %333 = vmatprep.subr.bf16.mxu0 %v314_v24  ;;  %833 = vmatpush3.bf16.msra.mxu1 %v317_v25  ;;  %v498_v29 = vpop.permute.xlu0 %497 }
  0x94   : > { %334 = vmatpush1.bf16.msra.mxu0 %v311_v28  ;;  %v505_v32 = vsel %vm503_vm4, %v498_v29, %v500_v26  ;;  %838 = vmatprep.subr.bf16.mxu1 %v941_v6 }
  0x95   : > { %v514_v34 = vand.u32 %v505_v32, %v309_v21  ;;  %426 = vmatprep.subr.bf16.mxu0 %v407_v27  ;;  %v502_v35 = vpop.permute.xlu1 %501 }
  0x96   : > { %835 = vmatmul.mubr.msk.bf16.vlgmr.msra.gmra.mxu1 %vm302_vm5, %v810_v30  ;;  %v506_v37 = vsel %vm503_vm4, %v500_v26, %v502_v35 }
  0x97   : > { %811 = vmatmul.mubr.msk.bf16.vlgmr.msra.gmra.mxu0 %vm302_vm5, %v810_v30  ;;  %v496_v36 = vpop.permute.xlu0 %495  ;;  %839 = vmatpush3.bf16.msra.mxu1 %v410_v31  ;;  %v517_v39 = vand.u32 %v506_v37, %v309_v21 }
  0x98   : > { %427 = vmatpush1.bf16.msra.mxu0 %v404_v33  ;;  %840 = vmatprep.mubr.msk.bf16.mxu1 %vm942_vm0, %v941_v6  ;;  %v504_v38 = vsel %vm503_vm4, %v496_v36, %v498_v29 }
  0x99   : > { %533 = vmatprep.subr.bf16.mxu0 %v514_v34  ;;  %844 = vmatprep.subr.bf16.mxu1 %v941_v6  ;;  %v511_v41 = vand.u32 %v504_v38, %v309_v21 }
  0x9a   : > { %444 = vmatprep.mubr.bf16.mxu0 %v943_v10 }
  0x9e   : > { %841 = vmatmul.mubr.msk.bf16.vlgmr.msra.gmra.mxu1 %vm302_vm5, %v286_v40 }
  0x9f   : > { %845 = vmatpush3.bf16.msra.mxu1 %v517_v39  ;;  %813 = vmatmul.mubr.msk.bf16.vlgmr.msra.gmra.mxu0 %vm302_vm5, %v286_v40 }
  0xa0   : > { %534 = vmatpush1.bf16.msra.mxu0 %v511_v41  ;;  %846 = vmatprep.mubr.msk.bf16.mxu1 %vm942_vm0, %v941_v6 }
  0xa1   : > { %551 = vmatprep.mubr.bf16.mxu0 %v943_v10 }
  0xa6   : > { %847 = vmatmul.mubr.msk.bf16.vlgmr.msra.gmra.mxu1 %vm302_vm5, %v815_v42 }
  0xa7   : > { %816 = vmatmul.mubr.msk.bf16.vlgmr.msra.gmra.mxu0 %vm302_vm5, %v815_v42 }
 0x156   : > { %v394_v43 = vpop.f32.mrf.mxu1 }
 0x157   : > { %v353_v44 = vpop.f32.mrf.mxu0 }
 0x158   : > { %v836_v45 = vpop.f32.mrf.mxu1 }
 0x159   : > { %v355_v46 = vpop.f32.mrf.mxu0 }
 0x15a   : > { %v397_v47 = vpop.f32.mrf.mxu1 }
 0x15b   : > { %v357_v48 = vpop.f32.mrf.mxu0 }
 0x15c   : > { %v837_v49 = vpop.f32.mrf.mxu1 }
 0x15d   : > { %v358_v50 = vpop.f32.mrf.mxu0 }
 0x15e   : > { %v487_v51 = vpop.f32.mrf.mxu1 }
 0x15f   : > { %v446_v52 = vpop.f32.mrf.mxu0  ;;  %v488_v58 = vadd.f32 %v487_v51, %v394_v43 }
 0x160   : > { %v842_v53 = vpop.f32.mrf.mxu1  ;;  %v447_v60 = vadd.f32 %v446_v52, %v353_v44 }
 0x161   : > { %v448_v54 = vpop.f32.mrf.mxu0 }
 0x162   : > { %v490_v55 = vpop.f32.mrf.mxu1  ;;  %v449_v1 = vadd.f32 %v448_v54, %v355_v46 }
 0x163   : > { %v450_v56 = vpop.f32.mrf.mxu0 }
 0x164   : > { %v843_v57 = vpop.f32.mrf.mxu1 }
 0x165   : > { %v451_v59 = vpop.f32.mrf.mxu0 }
 0x166   : > { %v594_v61 = vpop.f32.mrf.mxu1 }
 0x167   : > { %v602_v62 = vadd.f32 %v594_v61, %v488_v58  ;;  %v553_v63 = vpop.f32.mrf.mxu0 }
 0x168   : > { %v600_v2 = vadd.f32 %v553_v63, %v447_v60  ;;  %v848_v3 = vpop.f32.mrf.mxu1 }
 0x169   : > { %v555_v4 = vpop.f32.mrf.mxu0  ;;  %607 = sbr.rel (%p818_p8) target bundleno = 526 (0x20e), region = 36 }
 0x16a   : > { %v601_v5 = vadd.f32 %v555_v4, %v449_v1  ;;  %v597_v6 = vpop.f32.mrf.mxu1 }
 0x16b   : > { %v557_v7 = vpop.f32.mrf.mxu0 }
 0x16c   : > { %v849_v8 = vpop.f32.mrf.mxu1 }
 0x16d   : > { %v558_v9 = vpop.f32.mrf.mxu0 }
 0x16e   : > { %v608_v10 = vadd.f32 %v601_v5, %v600_v2  ;;  %v612_v11 = vmul.f32 %v600_v2, %v600_v2  ;;  %v613_v12 = vmul.f32 %v601_v5, %v601_v5  ;;  %v614_v13 = vmul.f32 %v602_v62, %v602_v62 }
 0x170   : > { %v609_v14 = vadd.f32 %v608_v10, %v602_v62  ;;  %v615_v15 = vadd.f32 %v613_v12, %v612_v11 }
 0x172   : > { %610 = vadd.xlane.f32.xlu0 %v609_v14  ;;  %v616_v16 = vadd.f32 %v615_v15, %v614_v13 }
 0x176   : > { %617 = vadd.xlane.f32.xlu0 %v616_v16 }
 0x1fb   : > { %v611_v17 = vpop.xlane.xlu0 %610  ;;  %622 = sbr.rel (%p819_p9) target bundleno = 514 (0x202), region = 40 }
 0x1ff   : > { %v618_v18 = vpop.xlane.xlu0 %617 }
 0x200   : > { %vm623_vm6 = vcmask 7168  }
 0x201   : > { %624 = vst.msk [vmem:[%s1010_s27] sm:$0xff] %vm623_vm6, %v611_v17  ;;  %625 = vst.msk [vmem:[%s1015_s30] sm:$0xff] %vm623_vm6, %v618_v18 }
 0x202 PF: > { %p820_p10 = scmp.le.s32.totalorder %s922_s15, 0 }
 0x204   : > { %629 = sbr.rel (%p820_p10) target bundleno = 526 (0x20e), region = 44 }
 0x209   : > { %v630_v19 = vld [vmem:[%s1010_s27] sm:$0xff]  ;;  %vm632_vm7 = vcmask 7168  }
 0x20a   : > { %v634_v20 = vld [vmem:[%s1015_s30] sm:$0xff]  ;;  %v631_v21 = vadd.f32 %v630_v19, %v611_v17 }
 0x20b   : > { %v635_v22 = vadd.f32 %v634_v20, %v618_v18 }
 0x20c   : > { %633 = vst.msk [vmem:[%s1010_s27] sm:$0xff] %vm632_vm7, %v631_v21 }
 0x20d   : > { %636 = vst.msk [vmem:[%s1015_s30] sm:$0xff] %vm632_vm7, %v635_v22 }
 0x20e PF: > { %p821_p11 = scmp.ne.s32.totalorder %s922_s15, 2 }
 0x20f   : > { %s644_s7 = smul.u32 (!%p821_p11), 384, %s922_s15  ;;  %p822_p12 = scmp.ne.s32.totalorder (!%p821_p11), %s922_s15, 0 }
 0x210   : > { %639 = sbr.rel (%p821_p11) target bundleno = 699 (0x2bb), region = 48 }
 0x211   : > { %s645_s8 = ssub.s32 (!%p821_p11), 1024, %s644_s7 }
 0x215   : > { %v641_v23 = vand.u32 127, %v274_v0  ;;  %v646_v26 = vstv %s645_s8 }
 0x217   : > { %v642_v24 = vadd.s32 128, %v641_v23  ;;  %v643_v25 = vadd.s32 256, %v641_v23  ;;  %vm647_vm8 = vcmp.lt.s32.totalorder %v641_v23, %v646_v26 }
 0x218   : > { %v650_v27 = vsel %vm647_vm8, %v600_v2, 0.0 }
 0x219   : > { %vm648_vm9 = vcmp.lt.s32.totalorder %v642_v24, %v646_v26  ;;  %vm649_vm10 = vcmp.lt.s32.totalorder %v643_v25, %v646_v26  ;;  %v657_v31 = vmul.f32 %v650_v27, %v650_v27 }
 0x21a   : > { %v651_v28 = vsel %vm648_vm9, %v601_v5, 0.0  ;;  %v652_v29 = vsel %vm649_vm10, %v602_v62, 0.0 }
 0x21b   : > { %v653_v30 = vadd.f32 %v651_v28, %v650_v27  ;;  %v658_v32 = vmul.f32 %v651_v28, %v651_v28  ;;  %v659_v33 = vmul.f32 %v652_v29, %v652_v29 }
 0x21d   : > { %v654_v34 = vadd.f32 %v653_v30, %v652_v29  ;;  %v660_v35 = vadd.f32 %v658_v32, %v657_v31 }
 0x21f   : > { %655 = vadd.xlane.f32.xlu0 %v654_v34  ;;  %v661_v36 = vadd.f32 %v660_v35, %v659_v33 }
 0x223   : > { %662 = vadd.xlane.f32.xlu0 %v661_v36 }
 0x2a8   : > { %v656_v0 = vpop.xlane.xlu0 %655  ;;  %667 = sbr.rel (%p822_p12) target bundleno = 687 (0x2af), region = 52 }
 0x2ac   : > { %v663_v37 = vpop.xlane.xlu0 %662 }
 0x2ad   : > { %vm668_vm11 = vcmask 7168  }
 0x2ae   : > { %669 = vst.msk [vmem:[%s1010_s27] sm:$0xff] %vm668_vm11, %v656_v0  ;;  %670 = vst.msk [vmem:[%s1015_s30] sm:$0xff] %vm668_vm11, %v663_v37 }
 0x2af PF: > { %p823_p13 = scmp.le.s32.totalorder %s922_s15, 0 }
 0x2b1   : > { %674 = sbr.rel (%p823_p13) target bundleno = 699 (0x2bb), region = 56 }
 0x2b6   : > { %v675_v38 = vld [vmem:[%s1010_s27] sm:$0xff]  ;;  %vm677_vm12 = vcmask 7168  }
 0x2b7   : > { %v679_v39 = vld [vmem:[%s1015_s30] sm:$0xff]  ;;  %v676_v40 = vadd.f32 %v675_v38, %v656_v0 }
 0x2b8   : > { %v680_v41 = vadd.f32 %v679_v39, %v663_v37 }
 0x2b9   : > { %678 = vst.msk [vmem:[%s1010_s27] sm:$0xff] %vm677_vm12, %v676_v40 }
 0x2ba   : > { %681 = vst.msk [vmem:[%s1015_s30] sm:$0xff] %vm677_vm12, %v680_v41 }
 0x2bb PF: > { %s15_s19 = sadd.s32 1, %s938_s19   ;;  %s1096_s15 = smov %s930_s17 }
 0x2bc   : > { %p12_p0 = scmp.ge.s32.totalorder %s15_s19, 8   ;;  %s1097_s16 = smov %s934_s18 }
 0x2bd   : > { %s1098_s17 = smov %s1101_s20  ;;  %s1099_s18 = smov %s1105_s21 }
 0x2be   :  { %14 = sbr.rel (!%p12_p0) target bundleno = 3 (0x3), region = 103 }

</bundles_post_ra>
